<compile_context>
chip_gen: v5e
topology: v5e:2x2
jax: 0.10.0
libtpu: 0.0.40
codegen_flags: <defaults>
</compile_context>

<pallas_src>
import jax
import jax.numpy as jnp
from jax.experimental import pallas as pl
from jax.experimental.pallas import tpu as pltpu


def _transpose_kernel(x_ref, o_ref):
    # x_ref: (h_blk, S, D) tile in VMEM; o_ref: (h_blk, D, S) tile in VMEM.
    o_ref[...] = jnp.swapaxes(x_ref[...], -1, -2)


def transpose_last_two(x):
    """Pallas TPU implementation of x.transpose(-1, -2) for a 4-D tensor."""
    B, H, S, D = x.shape
    heads = B * H
    # Glue: fold (B, H) into one leading axis.
    x2 = x.reshape(heads, S, D)

    # At most 2 grid steps: one per TensorCore on v7x, otherwise a single
    # full-array block.  Avoids per-step pipeline overhead dominating.
    num_blocks = 2 if (heads % 2 == 0 and heads >= 2) else 1
    h_blk = heads // num_blocks

    out = pl.pallas_call(
        _transpose_kernel,
        out_shape=jax.ShapeDtypeStruct((heads, D, S), x.dtype),
        grid_spec=pltpu.PrefetchScalarGridSpec(
            num_scalar_prefetch=0,
            grid=(num_blocks,),
            in_specs=[pl.BlockSpec((h_blk, S, D), lambda i: (i, 0, 0))],
            out_specs=pl.BlockSpec((h_blk, D, S), lambda i: (i, 0, 0)),
        ),
        compiler_params=pltpu.CompilerParams(
            dimension_semantics=("parallel",)
        ),
    )(x2)

    return out.reshape(B, H, D, S)


if __name__ == "__main__":
    key = jax.random.PRNGKey(0)
    x204 = jax.random.normal(key, (1, 4, 384, 64), dtype=jnp.float32)

    x216 = transpose_last_two(x204)
    jax.block_until_ready(x216)

    # Correctness check against plain JAX reference.
    ref = jnp.swapaxes(x204, -1, -2)
    assert x216.shape == (1, 4, 64, 384)
    assert jnp.array_equal(x216, ref)

    print("KERNEL_OK")
</pallas_src>

<mosaic_0001>
module attributes {stable_mosaic.version = 11 : i64} {
  func.func @_transpose_kernel(%arg0: i32, %arg1: memref<2x384x64xf32, #tpu.memory_space<vmem>>, %arg2: memref<2x64x384xf32, #tpu.memory_space<vmem>>) attributes {dimension_semantics = [#tpu.dimension_semantics<parallel>], iteration_bounds = array<i64: 2>, scalar_prefetch = 0 : i64, scratch_operands = 0 : i64, tpu.core_type = #tpu.core_type<tc>, window_params = [{transform_indices = @transform_0, window_bounds = array<i64: 2, 384, 64>}, {transform_indices = @transform_1, window_bounds = array<i64: 2, 64, 384>}]} {
    %c0 = arith.constant 0 : index
    %c0_0 = arith.constant 0 : index
    %c0_1 = arith.constant 0 : index
    %0 = vector.load %arg1[%c0, %c0_0, %c0_1] : memref<2x384x64xf32, #tpu.memory_space<vmem>>, vector<2x384x64xf32>
    %1 = tpu.transpose %0, [0, 2, 1] : vector<2x384x64xf32> -> vector<2x64x384xf32>
    %c0_2 = arith.constant 0 : index
    %c0_3 = arith.constant 0 : index
    %c0_4 = arith.constant 0 : index
    %2 = vector.load %arg2[%c0_2, %c0_3, %c0_4] : memref<2x64x384xf32, #tpu.memory_space<vmem>>, vector<2x64x384xf32>
    tpu.vector_store %arg2[%c0_2, %c0_3, %c0_4], %1 {strides = array<i32>} : memref<2x64x384xf32, #tpu.memory_space<vmem>>, vector<2x64x384xf32>,
    return
  }
  func.func @transform_0(%arg0: i32) -> (i32, i32, i32) {
    %c0_i32 = arith.constant 0 : i32
    %c0_i32_0 = arith.constant 0 : i32
    %c0_i32_1 = arith.constant 0 : i32
    return %arg0, %c0_i32, %c0_i32_0 : i32, i32, i32
  }
  func.func @transform_1(%arg0: i32) -> (i32, i32, i32) {
    %c0_i32 = arith.constant 0 : i32
    %c0_i32_0 = arith.constant 0 : i32
    %c0_i32_1 = arith.constant 0 : i32
    return %arg0, %c0_i32, %c0_i32_0 : i32, i32, i32
  }
}

</mosaic_0001>

<bundles_post_ra>
// kernel: tpu_custom_call.1
= control target key start
LH: loop header
LB: loop body
LE: loop exit
PB: predicated region body
PF: predicated region fallthrough
CT: control target
= control target key end

     0   :  { %6 = vsyncpa [#allocation3], 0  ;;  %s904_s0 = inlined_call_operand.vmem [shape: f32[4,384,64], index: 0, kind: input, shape index: {}]   ;;  %s905_s1 = inlined_call_operand.hbm [shape: f32[4,64,384], index: 1, kind: output, shape index: {}]  }
   0x1   :  { %8 = vsyncpa [#allocation3 + $0x1], 0  ;;  %s667_s6 = smov 0   ;;  %s669_s7 = smov 0  }
   0x2   :  { %s671_s8 = smov 0   ;;  %s673_s9 = smov 0  }
   0x3 LB: > { %s688_s10 = sadd.s32 4294967295, %s653_s9   ;;  %s536_s11 = sadd.s32 4294967294, %s653_s9   ;;  %s653_s9 = sphi %s673_s9, %s911_s9   ;;  %s649_s8 = sphi %s671_s8, %s910_s8   ;;  %s645_s7 = sphi %s669_s7, %s909_s7   ;;  %s641_s6 = sphi %s667_s6, %s908_s6  }
   0x4   : > { %s692_s12 = sadd.s32 1, %s653_s9   ;;  %s47_s13 = sadd.s32 1, %s649_s8 }
   0x5   : > { %s44_s14 = ssub.s32 %s653_s9, %s692_s12  ;;  %p57_p0 = scmp.ne.s32.totalorder %s649_s8, %s645_s7 }
   0x6   : > { %p45_p1 = scmp.eq.s32.totalorder %s44_s14, 0  ;;  %p58_p2 = scmp.eq.s32.totalorder %s688_s10, 1 }
   0x7   : > { %p63_p3 = scmp.ne.s32.totalorder %s645_s7, %s641_s6  ;;  %p64_p4 = scmp.eq.s32.totalorder %s536_s11, 1 }
   0x8   : > { %s703_s15 = scalar_select %p45_p1, %s649_s8, %s47_s13  }
   0x9   : > { %p705_p5 = por %p58_p2, %p57_p0  ;;  %p709_p6 = por %p64_p4, %p63_p3 }
   0xa   : > { %p539_p7 = scmp.ge.s32.totalorder %s653_s9, 1  ;;  %p92_p8 = scmp.lt.s32.totalorder %s653_s9, 3 }
   0xc   : > { %p93_p9 = pnand %p539_p7, %p92_p8 }
   0xd   : > { %s540_s18 = sshll.u32 (!%p93_p9), %s688_s10, 1  ;;  %s110_s23 = sand.u32 (!%p93_p9), 1, %s645_s7  }
   0xe   : > { %96 = sbr.rel (%p93_p9) target bundleno = 378 (0x17a), region = 24  ;;  %p114_p10 = scmp.lt.s32.totalorder (!%p93_p9), %s540_s18, 3 }
   0xf   : > { %s547_s24 = smul.u32 (!%p93_p9), 384, %s110_s23  ;;  %s458_s3 = scalar_lea.sflag (!%p93_p9), [#allocation3], %s110_s23 }
  0x10   : > { %s549_s26 = smul.u32 (!%p93_p9), 384, %s688_s10  ;;  %s611_s13 = scalar_lea.hbm (!%p93_p9), %s905_s1, 768 }
  0x11   : > { %s799_s25 = scalar_lea.vmem (!%p93_p9), [#allocation2], %s547_s24 }
  0x12   : > { %s470_s29 = scalar_lea.hbm (!%p93_p9), %s905_s1, %s549_s26  ;;  %s471_s30 = sshll.u32 (!%p93_p9), %s799_s25, 4  ;;  %s472_s30 = int_to_ptr.vmem [resolvable:$true] %s471_s30 }
  0x13   : > { %s913_s18 = smov (!%p114_p10, %s540_s18), 3  ;;  %s473_s2 = sshll.u32 %s470_s29, 4  ;;  %s474_s2 = int_to_ptr.hbm [resolvable:$true] %s473_s2 }
  0x14   : > { %s548_s19 = smul.u32 384, %s913_s18  ;;  %s605_s4 = sshra.s32 %s474_s2, 4  ;;  %s606_s4 = int_to_ptr.hbm [resolvable:$true] %s605_s4 }
  0x15   : > { %s607_s5 = scalar_lea.hbm %s606_s4, 384  ;;  %p612_p0 = scmp.lt.s32.totalorder %s606_s4, %s905_s1 }
  0x16   : > { %s719_s22 = scalar_lea.vmem %s904_s0, %s548_s19  ;;  %p608_p11 = scmp.ne.s32.totalorder %s606_s4, %s607_s5 }
  0x17   : > { %v137_v0 = vld [vmem:[%s719_s22 + $0x80] sm:$0xff]  ;;  %v138_v3 = vld [vmem:[%s719_s22 + $0x88] sm:$0xff]  ;;  %v139_v6 = vld [vmem:[%s719_s22 + $0x90] sm:$0xff]  ;;  %p613_p1 = scmp.lt.s32.totalorder %s611_s13, %s607_s5 }
  0x18   : > { %v121_v1 = vld [vmem:[%s719_s22] sm:$0xff]  ;;  %249 = vxpose.xlu1.b32.start [1/16] (narrow) %v137_v0, 64  ;;  %v122_v4 = vld [vmem:[%s719_s22 + $0x8] sm:$0xff]  ;;  %v123_v7 = vld [vmem:[%s719_s22 + $0x10] sm:$0xff]  ;;  %p609_p12 = pnand %p608_p11, %p705_p5 }
  0x19   : > { %217 = vxpose.xlu0.b32.start [1/16] (narrow) %v121_v1, 64  ;;  %v153_v2 = vld [vmem:[%s719_s22 + $0x100] sm:$0xff]  ;;  %v154_v5 = vld [vmem:[%s719_s22 + $0x108] sm:$0xff]  ;;  %v155_v8 = vld [vmem:[%s719_s22 + $0x110] sm:$0xff]  ;;  %p614_p2 = por %p613_p1, %p612_p0 }
  0x1a   : > { %281 = vxpose.xlu2.b32.start [1/16] (narrow) %v153_v2, 64  ;;  %v140_v9 = vld [vmem:[%s719_s22 + $0x98] sm:$0xff]  ;;  %v141_v12 = vld [vmem:[%s719_s22 + $0xa0] sm:$0xff]  ;;  %v142_v15 = vld [vmem:[%s719_s22 + $0xa8] sm:$0xff]  ;;  %p610_p13 = pneg %p609_p12 }
  0x1b   : > { %v124_v10 = vld [vmem:[%s719_s22 + $0x18] sm:$0xff]  ;;  %v125_v13 = vld [vmem:[%s719_s22 + $0x20] sm:$0xff]  ;;  %v126_v16 = vld [vmem:[%s719_s22 + $0x28] sm:$0xff] }
  0x1c   : > { %v156_v11 = vld [vmem:[%s719_s22 + $0x118] sm:$0xff]  ;;  %v157_v14 = vld [vmem:[%s719_s22 + $0x120] sm:$0xff]  ;;  %v158_v17 = vld [vmem:[%s719_s22 + $0x128] sm:$0xff]  ;;  %p615_p3 = pnand %p614_p2, %p610_p13 }
  0x1d   : > { %v143_v18 = vld [vmem:[%s719_s22 + $0xb0] sm:$0xff]  ;;  %v144_v21 = vld [vmem:[%s719_s22 + $0xb8] sm:$0xff]  ;;  %v145_v24 = vld [vmem:[%s719_s22 + $0xc0] sm:$0xff] }
  0x1e   : > { %v127_v19 = vld [vmem:[%s719_s22 + $0x30] sm:$0xff]  ;;  %v128_v22 = vld [vmem:[%s719_s22 + $0x38] sm:$0xff]  ;;  %v129_v25 = vld [vmem:[%s719_s22 + $0x40] sm:$0xff] }
  0x1f   : > { %v159_v20 = vld [vmem:[%s719_s22 + $0x130] sm:$0xff]  ;;  %v160_v23 = vld [vmem:[%s719_s22 + $0x138] sm:$0xff]  ;;  %v161_v26 = vld [vmem:[%s719_s22 + $0x140] sm:$0xff] }
  0x20   : > { %250 = vxpose.xlu1.b32.cont [2/16] (narrow) %v138_v3, 64  ;;  %v146_v27 = vld [vmem:[%s719_s22 + $0xc8] sm:$0xff]  ;;  %v147_v30 = vld [vmem:[%s719_s22 + $0xd0] sm:$0xff]  ;;  %v148_v33 = vld [vmem:[%s719_s22 + $0xd8] sm:$0xff] }
  0x21   : > { %218 = vxpose.xlu0.b32.cont [2/16] (narrow) %v122_v4, 64  ;;  %v130_v28 = vld [vmem:[%s719_s22 + $0x48] sm:$0xff]  ;;  %v131_v31 = vld [vmem:[%s719_s22 + $0x50] sm:$0xff]  ;;  %v132_v34 = vld [vmem:[%s719_s22 + $0x58] sm:$0xff] }
  0x22   : > { %282 = vxpose.xlu2.b32.cont [2/16] (narrow) %v154_v5, 64  ;;  %v162_v29 = vld [vmem:[%s719_s22 + $0x148] sm:$0xff]  ;;  %v163_v32 = vld [vmem:[%s719_s22 + $0x150] sm:$0xff]  ;;  %v164_v35 = vld [vmem:[%s719_s22 + $0x158] sm:$0xff] }
  0x23   : > { %v149_v36 = vld [vmem:[%s719_s22 + $0xe0] sm:$0xff]  ;;  %v150_v39 = vld [vmem:[%s719_s22 + $0xe8] sm:$0xff]  ;;  %v151_v42 = vld [vmem:[%s719_s22 + $0xf0] sm:$0xff] }
  0x24   : > { %v133_v37 = vld [vmem:[%s719_s22 + $0x60] sm:$0xff]  ;;  %v134_v40 = vld [vmem:[%s719_s22 + $0x68] sm:$0xff]  ;;  %v135_v43 = vld [vmem:[%s719_s22 + $0x70] sm:$0xff] }
  0x25   : > { %v165_v38 = vld [vmem:[%s719_s22 + $0x160] sm:$0xff]  ;;  %v166_v41 = vld [vmem:[%s719_s22 + $0x168] sm:$0xff]  ;;  %v167_v44 = vld [vmem:[%s719_s22 + $0x170] sm:$0xff] }
  0x26   : > { %v152_v45 = vld [vmem:[%s719_s22 + $0xf8] sm:$0xff]  ;;  %v185_v48 = vld [vmem:[%s719_s22 + $0x200] sm:$0xff]  ;;  %v186_v51 = vld [vmem:[%s719_s22 + $0x208] sm:$0xff] }
  0x27   : > { %v136_v46 = vld [vmem:[%s719_s22 + $0x78] sm:$0xff]  ;;  %v169_v49 = vld [vmem:[%s719_s22 + $0x180] sm:$0xff]  ;;  %v170_v52 = vld [vmem:[%s719_s22 + $0x188] sm:$0xff] }
  0x28   : > { %251 = vxpose.xlu1.b32.cont [3/16] (narrow) %v139_v6, 64  ;;  %v168_v47 = vld [vmem:[%s719_s22 + $0x178] sm:$0xff]  ;;  %v201_v50 = vld [vmem:[%s719_s22 + $0x280] sm:$0xff]  ;;  %v202_v53 = vld [vmem:[%s719_s22 + $0x288] sm:$0xff] }
  0x29   : > { %219 = vxpose.xlu0.b32.cont [3/16] (narrow) %v123_v7, 64  ;;  %v187_v54 = vld [vmem:[%s719_s22 + $0x210] sm:$0xff]  ;;  %v188_v57 = vld [vmem:[%s719_s22 + $0x218] sm:$0xff]  ;;  %v189_v60 = vld [vmem:[%s719_s22 + $0x220] sm:$0xff] }
  0x2a   : > { %283 = vxpose.xlu2.b32.cont [3/16] (narrow) %v155_v8, 64  ;;  %v171_v55 = vld [vmem:[%s719_s22 + $0x190] sm:$0xff]  ;;  %v172_v58 = vld [vmem:[%s719_s22 + $0x198] sm:$0xff]  ;;  %v173_v61 = vld [vmem:[%s719_s22 + $0x1a0] sm:$0xff] }
  0x2b   : > { %v203_v56 = vld [vmem:[%s719_s22 + $0x290] sm:$0xff]  ;;  %v204_v59 = vld [vmem:[%s719_s22 + $0x298] sm:$0xff]  ;;  %v205_v62 = vld [vmem:[%s719_s22 + $0x2a0] sm:$0xff] }
  0x2c   : > { %v190_v63 = vld [vmem:[%s719_s22 + $0x228] sm:$0xff]  ;;  %v191_v2 = vld [vmem:[%s719_s22 + $0x230] sm:$0xff]  ;;  %v192_v5 = vld [vmem:[%s719_s22 + $0x238] sm:$0xff] }
  0x2d   : > { %v174_v0 = vld [vmem:[%s719_s22 + $0x1a8] sm:$0xff]  ;;  %v175_v3 = vld [vmem:[%s719_s22 + $0x1b0] sm:$0xff]  ;;  %v176_v6 = vld [vmem:[%s719_s22 + $0x1b8] sm:$0xff] }
  0x2e   : > { %v206_v1 = vld [vmem:[%s719_s22 + $0x2a8] sm:$0xff]  ;;  %v207_v4 = vld [vmem:[%s719_s22 + $0x2b0] sm:$0xff]  ;;  %v208_v7 = vld [vmem:[%s719_s22 + $0x2b8] sm:$0xff] }
  0x2f   : > { %v193_v8 = vld [vmem:[%s719_s22 + $0x240] sm:$0xff] }
  0x30   : > { %252 = vxpose.xlu1.b32.cont [4/16] (narrow) %v140_v9, 64  ;;  %v177_v9 = vld [vmem:[%s719_s22 + $0x1c0] sm:$0xff] }
  0x31   : > { %220 = vxpose.xlu0.b32.cont [4/16] (narrow) %v124_v10, 64  ;;  %v209_v10 = vld [vmem:[%s719_s22 + $0x2c0] sm:$0xff] }
  0x32   : > { %284 = vxpose.xlu2.b32.cont [4/16] (narrow) %v156_v11, 64 }
  0x38   : > { %253 = vxpose.xlu1.b32.cont [5/16] (narrow) %v141_v12, 64 }
  0x39   : > { %221 = vxpose.xlu0.b32.cont [5/16] (narrow) %v125_v13, 64 }
  0x3a   : > { %285 = vxpose.xlu2.b32.cont [5/16] (narrow) %v157_v14, 64  ;;  %v194_v14 = vld [vmem:[%s719_s22 + $0x248] sm:$0xff] }
  0x40   : > { %254 = vxpose.xlu1.b32.cont [6/16] (narrow) %v142_v15, 64  ;;  %v178_v15 = vld [vmem:[%s719_s22 + $0x1c8] sm:$0xff] }
  0x41   : > { %222 = vxpose.xlu0.b32.cont [6/16] (narrow) %v126_v16, 64  ;;  %v210_v16 = vld [vmem:[%s719_s22 + $0x2c8] sm:$0xff] }
  0x42   : > { %286 = vxpose.xlu2.b32.cont [6/16] (narrow) %v158_v17, 64 }
  0x48   : > { %255 = vxpose.xlu1.b32.cont [7/16] (narrow) %v143_v18, 64 }
  0x49   : > { %223 = vxpose.xlu0.b32.cont [7/16] (narrow) %v127_v19, 64 }
  0x4a   : > { %287 = vxpose.xlu2.b32.cont [7/16] (narrow) %v159_v20, 64  ;;  %v195_v20 = vld [vmem:[%s719_s22 + $0x250] sm:$0xff] }
  0x50   : > { %256 = vxpose.xlu1.b32.cont [8/16] (narrow) %v144_v21, 64  ;;  %v179_v21 = vld [vmem:[%s719_s22 + $0x1d0] sm:$0xff] }
  0x51   : > { %224 = vxpose.xlu0.b32.cont [8/16] (narrow) %v128_v22, 64  ;;  %v211_v22 = vld [vmem:[%s719_s22 + $0x2d0] sm:$0xff] }
  0x52   : > { %288 = vxpose.xlu2.b32.cont [8/16] (narrow) %v160_v23, 64 }
  0x58   : > { %257 = vxpose.xlu1.b32.cont [9/16] (narrow) %v145_v24, 64 }
  0x59   : > { %225 = vxpose.xlu0.b32.cont [9/16] (narrow) %v129_v25, 64 }
  0x5a   : > { %289 = vxpose.xlu2.b32.cont [9/16] (narrow) %v161_v26, 64  ;;  %v196_v26 = vld [vmem:[%s719_s22 + $0x258] sm:$0xff] }
  0x60   : > { %258 = vxpose.xlu1.b32.cont [10/16] (narrow) %v146_v27, 64  ;;  %v180_v27 = vld [vmem:[%s719_s22 + $0x1d8] sm:$0xff] }
  0x61   : > { %226 = vxpose.xlu0.b32.cont [10/16] (narrow) %v130_v28, 64  ;;  %v212_v28 = vld [vmem:[%s719_s22 + $0x2d8] sm:$0xff] }
  0x62   : > { %290 = vxpose.xlu2.b32.cont [10/16] (narrow) %v162_v29, 64 }
  0x68   : > { %259 = vxpose.xlu1.b32.cont [11/16] (narrow) %v147_v30, 64 }
  0x69   : > { %227 = vxpose.xlu0.b32.cont [11/16] (narrow) %v131_v31, 64 }
  0x6a   : > { %291 = vxpose.xlu2.b32.cont [11/16] (narrow) %v163_v32, 64  ;;  %v197_v32 = vld [vmem:[%s719_s22 + $0x260] sm:$0xff] }
  0x70   : > { %260 = vxpose.xlu1.b32.cont [12/16] (narrow) %v148_v33, 64  ;;  %v181_v33 = vld [vmem:[%s719_s22 + $0x1e0] sm:$0xff] }
  0x71   : > { %228 = vxpose.xlu0.b32.cont [12/16] (narrow) %v132_v34, 64  ;;  %v213_v34 = vld [vmem:[%s719_s22 + $0x2e0] sm:$0xff] }
  0x72   : > { %292 = vxpose.xlu2.b32.cont [12/16] (narrow) %v164_v35, 64 }
  0x78   : > { %261 = vxpose.xlu1.b32.cont [13/16] (narrow) %v149_v36, 64 }
  0x79   : > { %229 = vxpose.xlu0.b32.cont [13/16] (narrow) %v133_v37, 64 }
  0x7a   : > { %293 = vxpose.xlu2.b32.cont [13/16] (narrow) %v165_v38, 64  ;;  %v198_v38 = vld [vmem:[%s719_s22 + $0x268] sm:$0xff] }
  0x80   : > { %262 = vxpose.xlu1.b32.cont [14/16] (narrow) %v150_v39, 64  ;;  %v182_v39 = vld [vmem:[%s719_s22 + $0x1e8] sm:$0xff] }
  0x81   : > { %230 = vxpose.xlu0.b32.cont [14/16] (narrow) %v134_v40, 64  ;;  %v214_v40 = vld [vmem:[%s719_s22 + $0x2e8] sm:$0xff] }
  0x82   : > { %294 = vxpose.xlu2.b32.cont [14/16] (narrow) %v166_v41, 64 }
  0x88   : > { %263 = vxpose.xlu1.b32.cont [15/16] (narrow) %v151_v42, 64 }
  0x89   : > { %231 = vxpose.xlu0.b32.cont [15/16] (narrow) %v135_v43, 64 }
  0x8a   : > { %295 = vxpose.xlu2.b32.cont [15/16] (narrow) %v167_v44, 64  ;;  %v199_v44 = vld [vmem:[%s719_s22 + $0x270] sm:$0xff] }
  0x90   : > { %264 = vxpose.xlu1.b32.end [16/16] (narrow) %v152_v45, 64  ;;  %v183_v45 = vld [vmem:[%s719_s22 + $0x1f0] sm:$0xff] }
  0x91   : > { %232 = vxpose.xlu0.b32.end [16/16] (narrow) %v136_v46, 64  ;;  %v215_v46 = vld [vmem:[%s719_s22 + $0x2f0] sm:$0xff] }
  0x92   : > { %296 = vxpose.xlu2.b32.end [16/16] (narrow) %v168_v47, 64 }
  0x98   : > { %345 = vxpose.xlu1.b32.start [1/16] (narrow) %v185_v48, 64 }
  0x99   : > { %313 = vxpose.xlu0.b32.start [1/16] (narrow) %v169_v49, 64 }
  0x9a   : > { %377 = vxpose.xlu2.b32.start [1/16] (narrow) %v201_v50, 64  ;;  %v200_v50 = vld [vmem:[%s719_s22 + $0x278] sm:$0xff] }
  0xa0   : > { %346 = vxpose.xlu1.b32.cont [2/16] (narrow) %v186_v51, 64  ;;  %v184_v51 = vld [vmem:[%s719_s22 + $0x1f8] sm:$0xff] }
  0xa1   : > { %314 = vxpose.xlu0.b32.cont [2/16] (narrow) %v170_v52, 64  ;;  %v216_v52 = vld [vmem:[%s719_s22 + $0x2f8] sm:$0xff] }
  0xa2   : > { %378 = vxpose.xlu2.b32.cont [2/16] (narrow) %v202_v53, 64 }
  0xa8   : > { %347 = vxpose.xlu1.b32.cont [3/16] (narrow) %v187_v54, 64 }
  0xa9   : > { %315 = vxpose.xlu0.b32.cont [3/16] (narrow) %v171_v55, 64 }
  0xaa   : > { %379 = vxpose.xlu2.b32.cont [3/16] (narrow) %v203_v56, 64 }
  0xb0   : > { %348 = vxpose.xlu1.b32.cont [4/16] (narrow) %v188_v57, 64 }
  0xb1   : > { %316 = vxpose.xlu0.b32.cont [4/16] (narrow) %v172_v58, 64 }
  0xb2   : > { %380 = vxpose.xlu2.b32.cont [4/16] (narrow) %v204_v59, 64 }
  0xb3   : > { %v297_v11 = vpop.trf.xlu2 }
  0xb4   : > { %411 = vst [vmem:[%s799_s25 + $0x10] sm:$0xff] %v297_v11 }
  0xb8   : > { %349 = vxpose.xlu1.b32.cont [5/16] (narrow) %v189_v60, 64 }
  0xb9   : > { %317 = vxpose.xlu0.b32.cont [5/16] (narrow) %v173_v61, 64 }
  0xba   : > { %381 = vxpose.xlu2.b32.cont [5/16] (narrow) %v205_v62, 64 }
  0xbb   : > { %v298_v17 = vpop.trf.xlu2 }
  0xbc   : > { %v265_v12 = vpop.trf.xlu1  ;;  %414 = vst [vmem:[%s799_s25 + $0x28] sm:$0xff] %v298_v17 }
  0xbd   : > { %v233_v13 = vpop.trf.xlu0  ;;  %410 = vst [vmem:[%s799_s25 + $0x8] sm:$0xff] %v265_v12 }
  0xbe   : > { %409 = vst [vmem:[%s799_s25] sm:$0xff] %v233_v13 }
  0xc0   : > { %350 = vxpose.xlu1.b32.cont [6/16] (narrow) %v190_v63, 64 }
  0xc1   : > { %318 = vxpose.xlu0.b32.cont [6/16] (narrow) %v174_v0, 64 }
  0xc2   : > { %382 = vxpose.xlu2.b32.cont [6/16] (narrow) %v206_v1, 64 }
  0xc3   : > { %v299_v23 = vpop.trf.xlu2 }
  0xc4   : > { %v266_v18 = vpop.trf.xlu1  ;;  %417 = vst [vmem:[%s799_s25 + $0x40] sm:$0xff] %v299_v23 }
  0xc5   : > { %v234_v19 = vpop.trf.xlu0  ;;  %413 = vst [vmem:[%s799_s25 + $0x20] sm:$0xff] %v266_v18 }
  0xc6   : > { %412 = vst [vmem:[%s799_s25 + $0x18] sm:$0xff] %v234_v19 }
  0xc8   : > { %351 = vxpose.xlu1.b32.cont [7/16] (narrow) %v191_v2, 64 }
  0xc9   : > { %319 = vxpose.xlu0.b32.cont [7/16] (narrow) %v175_v3, 64 }
  0xca   : > { %383 = vxpose.xlu2.b32.cont [7/16] (narrow) %v207_v4, 64 }
  0xcb   : > { %v300_v29 = vpop.trf.xlu2 }
  0xcc   : > { %v267_v24 = vpop.trf.xlu1  ;;  %420 = vst [vmem:[%s799_s25 + $0x58] sm:$0xff] %v300_v29 }
  0xcd   : > { %v235_v25 = vpop.trf.xlu0  ;;  %416 = vst [vmem:[%s799_s25 + $0x38] sm:$0xff] %v267_v24 }
  0xce   : > { %415 = vst [vmem:[%s799_s25 + $0x30] sm:$0xff] %v235_v25 }
  0xd0   : > { %352 = vxpose.xlu1.b32.cont [8/16] (narrow) %v192_v5, 64 }
  0xd1   : > { %320 = vxpose.xlu0.b32.cont [8/16] (narrow) %v176_v6, 64 }
  0xd2   : > { %384 = vxpose.xlu2.b32.cont [8/16] (narrow) %v208_v7, 64 }
  0xd3   : > { %v301_v35 = vpop.trf.xlu2 }
  0xd4   : > { %v268_v30 = vpop.trf.xlu1  ;;  %423 = vst [vmem:[%s799_s25 + $0x70] sm:$0xff] %v301_v35 }
  0xd5   : > { %v236_v31 = vpop.trf.xlu0  ;;  %419 = vst [vmem:[%s799_s25 + $0x50] sm:$0xff] %v268_v30 }
  0xd6   : > { %418 = vst [vmem:[%s799_s25 + $0x48] sm:$0xff] %v236_v31 }
  0xd8   : > { %353 = vxpose.xlu1.b32.cont [9/16] (narrow) %v193_v8, 64 }
  0xd9   : > { %321 = vxpose.xlu0.b32.cont [9/16] (narrow) %v177_v9, 64 }
  0xda   : > { %385 = vxpose.xlu2.b32.cont [9/16] (narrow) %v209_v10, 64 }
  0xdb   : > { %v302_v41 = vpop.trf.xlu2 }
  0xdc   : > { %v269_v36 = vpop.trf.xlu1  ;;  %426 = vst [vmem:[%s799_s25 + $0x88] sm:$0xff] %v302_v41 }
  0xdd   : > { %v237_v37 = vpop.trf.xlu0  ;;  %422 = vst [vmem:[%s799_s25 + $0x68] sm:$0xff] %v269_v36 }
  0xde   : > { %421 = vst [vmem:[%s799_s25 + $0x60] sm:$0xff] %v237_v37 }
  0xe0   : > { %354 = vxpose.xlu1.b32.cont [10/16] (narrow) %v194_v14, 64 }
  0xe1   : > { %322 = vxpose.xlu0.b32.cont [10/16] (narrow) %v178_v15, 64 }
  0xe2   : > { %386 = vxpose.xlu2.b32.cont [10/16] (narrow) %v210_v16, 64 }
  0xe3   : > { %v303_v47 = vpop.trf.xlu2 }
  0xe4   : > { %v270_v42 = vpop.trf.xlu1  ;;  %429 = vst [vmem:[%s799_s25 + $0xa0] sm:$0xff] %v303_v47 }
  0xe5   : > { %v238_v43 = vpop.trf.xlu0  ;;  %425 = vst [vmem:[%s799_s25 + $0x80] sm:$0xff] %v270_v42 }
  0xe6   : > { %424 = vst [vmem:[%s799_s25 + $0x78] sm:$0xff] %v238_v43 }
  0xe8   : > { %355 = vxpose.xlu1.b32.cont [11/16] (narrow) %v195_v20, 64 }
  0xe9   : > { %323 = vxpose.xlu0.b32.cont [11/16] (narrow) %v179_v21, 64 }
  0xea   : > { %387 = vxpose.xlu2.b32.cont [11/16] (narrow) %v211_v22, 64 }
  0xeb   : > { %v304_v53 = vpop.trf.xlu2 }
  0xec   : > { %v271_v48 = vpop.trf.xlu1  ;;  %432 = vst [vmem:[%s799_s25 + $0xb8] sm:$0xff] %v304_v53 }
  0xed   : > { %v239_v49 = vpop.trf.xlu0  ;;  %428 = vst [vmem:[%s799_s25 + $0x98] sm:$0xff] %v271_v48 }
  0xee   : > { %427 = vst [vmem:[%s799_s25 + $0x90] sm:$0xff] %v239_v49 }
  0xf0   : > { %356 = vxpose.xlu1.b32.cont [12/16] (narrow) %v196_v26, 64 }
  0xf1   : > { %324 = vxpose.xlu0.b32.cont [12/16] (narrow) %v180_v27, 64 }
  0xf2   : > { %388 = vxpose.xlu2.b32.cont [12/16] (narrow) %v212_v28, 64 }
  0xf4   : > { %v272_v54 = vpop.trf.xlu1 }
  0xf5   : > { %v240_v55 = vpop.trf.xlu0  ;;  %431 = vst [vmem:[%s799_s25 + $0xb0] sm:$0xff] %v272_v54 }
  0xf6   : > { %430 = vst [vmem:[%s799_s25 + $0xa8] sm:$0xff] %v240_v55 }
  0xf8   : > { %357 = vxpose.xlu1.b32.cont [13/16] (narrow) %v197_v32, 64 }
  0xf9   : > { %325 = vxpose.xlu0.b32.cont [13/16] (narrow) %v181_v33, 64 }
  0xfa   : > { %389 = vxpose.xlu2.b32.cont [13/16] (narrow) %v213_v34, 64 }
 0x100   : > { %358 = vxpose.xlu1.b32.cont [14/16] (narrow) %v198_v38, 64 }
 0x101   : > { %326 = vxpose.xlu0.b32.cont [14/16] (narrow) %v182_v39, 64 }
 0x102   : > { %390 = vxpose.xlu2.b32.cont [14/16] (narrow) %v214_v40, 64 }
 0x108   : > { %359 = vxpose.xlu1.b32.cont [15/16] (narrow) %v199_v44, 64 }
 0x109   : > { %327 = vxpose.xlu0.b32.cont [15/16] (narrow) %v183_v45, 64 }
 0x10a   : > { %391 = vxpose.xlu2.b32.cont [15/16] (narrow) %v215_v46, 64 }
 0x110   : > { %360 = vxpose.xlu1.b32.end [16/16] (narrow) %v200_v50, 64 }
 0x111   : > { %328 = vxpose.xlu0.b32.end [16/16] (narrow) %v184_v51, 64 }
 0x112   : > { %392 = vxpose.xlu2.b32.end [16/16] (narrow) %v216_v52, 64 }
 0x133   : > { %v393_v56 = vpop.trf.xlu2 }
 0x134   : > { %435 = vst [vmem:[%s799_s25 + $0xd0] sm:$0xff] %v393_v56 }
 0x13b   : > { %v394_v57 = vpop.trf.xlu2 }
 0x13c   : > { %438 = vst [vmem:[%s799_s25 + $0xe8] sm:$0xff] %v394_v57  ;;  %v361_v58 = vpop.trf.xlu1 }
 0x13d   : > { %v329_v59 = vpop.trf.xlu0  ;;  %434 = vst [vmem:[%s799_s25 + $0xc8] sm:$0xff] %v361_v58 }
 0x13e   : > { %433 = vst [vmem:[%s799_s25 + $0xc0] sm:$0xff] %v329_v59 }
 0x143   : > { %v395_v60 = vpop.trf.xlu2 }
 0x144   : > { %441 = vst [vmem:[%s799_s25 + $0x100] sm:$0xff] %v395_v60  ;;  %v362_v61 = vpop.trf.xlu1 }
 0x145   : > { %v330_v62 = vpop.trf.xlu0  ;;  %437 = vst [vmem:[%s799_s25 + $0xe0] sm:$0xff] %v362_v61 }
 0x146   : > { %436 = vst [vmem:[%s799_s25 + $0xd8] sm:$0xff] %v330_v62 }
 0x14b   : > { %v396_v63 = vpop.trf.xlu2 }
 0x14c   : > { %444 = vst [vmem:[%s799_s25 + $0x118] sm:$0xff] %v396_v63  ;;  %v363_v0 = vpop.trf.xlu1 }
 0x14d   : > { %v331_v1 = vpop.trf.xlu0  ;;  %440 = vst [vmem:[%s799_s25 + $0xf8] sm:$0xff] %v363_v0 }
 0x14e   : > { %439 = vst [vmem:[%s799_s25 + $0xf0] sm:$0xff] %v331_v1 }
 0x153   : > { %v397_v2 = vpop.trf.xlu2 }
 0x154   : > { %447 = vst [vmem:[%s799_s25 + $0x130] sm:$0xff] %v397_v2  ;;  %v364_v3 = vpop.trf.xlu1 }
 0x155   : > { %v332_v4 = vpop.trf.xlu0  ;;  %443 = vst [vmem:[%s799_s25 + $0x110] sm:$0xff] %v364_v3 }
 0x156   : > { %442 = vst [vmem:[%s799_s25 + $0x108] sm:$0xff] %v332_v4 }
 0x15b   : > { %v398_v5 = vpop.trf.xlu2 }
 0x15c   : > { %450 = vst [vmem:[%s799_s25 + $0x148] sm:$0xff] %v398_v5  ;;  %v365_v6 = vpop.trf.xlu1 }
 0x15d   : > { %v333_v7 = vpop.trf.xlu0  ;;  %446 = vst [vmem:[%s799_s25 + $0x128] sm:$0xff] %v365_v6 }
 0x15e   : > { %445 = vst [vmem:[%s799_s25 + $0x120] sm:$0xff] %v333_v7 }
 0x163   : > { %v399_v8 = vpop.trf.xlu2 }
 0x164   : > { %453 = vst [vmem:[%s799_s25 + $0x160] sm:$0xff] %v399_v8  ;;  %v366_v9 = vpop.trf.xlu1 }
 0x165   : > { %v334_v10 = vpop.trf.xlu0  ;;  %449 = vst [vmem:[%s799_s25 + $0x140] sm:$0xff] %v366_v9 }
 0x166   : > { %448 = vst [vmem:[%s799_s25 + $0x138] sm:$0xff] %v334_v10 }
 0x16b   : > { %v400_v11 = vpop.trf.xlu2 }
 0x16c   : > { %456 = vst [vmem:[%s799_s25 + $0x178] sm:$0xff] %v400_v11  ;;  %v367_v12 = vpop.trf.xlu1 }
 0x16d   : > { %v335_v13 = vpop.trf.xlu0  ;;  %452 = vst [vmem:[%s799_s25 + $0x158] sm:$0xff] %v367_v12 }
 0x16e   : > { %451 = vst [vmem:[%s799_s25 + $0x150] sm:$0xff] %v335_v13 }
 0x174   : > { %v368_v14 = vpop.trf.xlu1 }
 0x175   : > { %v336_v15 = vpop.trf.xlu0  ;;  %455 = vst [vmem:[%s799_s25 + $0x170] sm:$0xff] %v368_v14 }
 0x176   : > { %454 = vst [vmem:[%s799_s25 + $0x168] sm:$0xff] %v336_v15 }
 0x177   : > { %618 = shalt.err (!%p615_p3)
}
 0x178   : > { %s655_s19 = smov 384   ;;  %s656_s20 = smov 24  }
 0x179   : > { %550 = dma.vmem_to_hbm [thread:$0]  (%p705_p5), %s472_s30, 6144, %s474_s2, %s458_s3, %s655_s19, %s655_s19, %s656_s20  }
 0x17a PF: > { %p556_p4 = scmp.ge.s32.totalorder %s653_s9, 2  ;;  %s488_s21 = sand.u32 1, %s641_s6  }
 0x17b   : > { %s489_s22 = scalar_lea.sflag [#allocation3], %s488_s21 }
 0x17c   : > { %p553_p7 = pnand %p556_p4, %p709_p6 }
 0x17e   : > { %p554_p8 = pneg %p553_p7 }
 0x180   : > { %636 = dma.done.wait (%p554_p8), %s489_s22, 6144  }
 0x181   : > { %638 = vsyncadd (%p554_p8), %s489_s22, 4294961152  ;;  %p11_p9 = scmp.ge.s32.totalorder %s692_s12, 4   ;;  %s908_s6 = smov %s645_s7 }
 0x182   : > { %s909_s7 = smov %s649_s8  ;;  %s910_s8 = smov %s703_s15 }
 0x183   : > { %s911_s9 = smov %s692_s12  ;;  %13 = sbr.rel (!%p11_p9) target bundleno = 3 (0x3), region = 59 }
 0x188   :  { %495 = vsyncpa [#allocation3], 1 }
 0x189   :  { %497 = vsyncpa [#allocation3 + $0x1], 1 }

</bundles_post_ra>
